<compile_context>
chip_gen: v5e
topology: v5e:2x2
jax: 0.10.0
libtpu: 0.0.40
codegen_flags: <defaults>
</compile_context>

<pallas_src>
import functools

import jax
import jax.numpy as jnp
from jax import lax
from jax.experimental import pallas as pl
from jax.experimental.pallas import tpu as pltpu


def _round_up(n, m):
    return ((n + m - 1) // m) * m


def _default_act_dtype():
    """bf16 tanh/bias path on chips with a bf16 VPU/EUP (v6e/v7x), f32 otherwise."""
    try:
        kind = jax.devices()[0].device_kind.lower()
    except Exception:
        return jnp.float32
    return jnp.bfloat16 if ("v6" in kind or "v7" in kind) else jnp.float32


def _decoder_kernel(x_ref,
                    w1_ref, b1_ref, w2_ref, b2_ref, w3_ref, b3_ref,
                    w4_ref, b4_ref, w5_ref, b5_ref,
                    o_ref):
    """Fused 5-layer MLP in (features, batch) layout, everything VMEM-resident.

    x_ref: (in_features, tb) bf16, batch tile on lanes.
    Hidden wK_ref: (out, in) bf16; hidden bK_ref: (out, 1) in the act dtype.
    w5_ref: (128, out_size) bf16; b5_ref: (1, out_size) f32.
    o_ref:  (tb, out_size).
    """
    h = x_ref[...]                                          # (in, tb) bf16

    def hidden(h, w_ref, b_ref):
        # (out, in) @ (in, tb) -> (out, tb), f32 accumulation on the MXU.
        acc = jnp.dot(w_ref[...], h, preferred_element_type=jnp.float32)
        # Bias-add + tanh in the bias dtype: bf16 on v6e/v7x, f32 on v5e.
        z = acc.astype(b_ref.dtype) + b_ref[...]
        return jnp.tanh(z).astype(jnp.bfloat16)

    h = hidden(h, w1_ref, b1_ref)                           # (16,  tb)
    h = hidden(h, w2_ref, b2_ref)                           # (32,  tb)
    h = hidden(h, w3_ref, b3_ref)                           # (64,  tb)
    h = hidden(h, w4_ref, b4_ref)                           # (128, tb)

    # Final Linear: contract the feature axis of both operands (lhs-transposed
    # matmul on the MXU) so the result lands directly as (tb, out_size).
    out = lax.dot_general(h, w5_ref[...], (((0,), (0,)), ((), ())),
                          preferred_element_type=jnp.float32)
    o_ref[...] = (out + b5_ref[...]).astype(o_ref.dtype)


@functools.partial(jax.jit, static_argnames=("block_batch",))
def decoder_2_forward(x, kernel_params, *, block_batch=None):
    """Decoder_2 forward: x (B, num_units) f32 -> (B, out_size) f32."""
    B, in_features = x.shape
    (w1, b1, w2, b2, w3, b3, w4, b4, w5, b5) = kernel_params
    out_size = w5.shape[-1]
    hidden_dims = (w1.shape[0], w2.shape[0], w3.shape[0], w4.shape[0])

    # ---- batch tile (lane dim of the transposed activations) -------------
    if block_batch is None:
        if B <= 128:
            tb = B                   # single tile
        elif B <= 512:
            tb = 128                 # >= 2 grid steps -> both v7x TensorCores
        else:
            tb = 256                 # cap tile to bound vreg pressure / spill
    else:
        tb = max(1, min(block_batch, B))
    if tb < B:
        tb = _round_up(tb, 128)      # lane-dim blocks must be 128-multiples
        if tb >= B:
            tb = B
    grid = (pl.cdiv(B, tb),)

    # ---- kernel operands ---------------------------------------------------
    xt = x.T.astype(jnp.bfloat16)    # (in_features, B): batch on lanes

    x_spec = pl.BlockSpec((in_features, tb), lambda i: (0, i))
    # Weights/biases are tiny, grid-invariant (constant-index) full blocks, so
    # Pallas DMAs them once and does not re-fetch across the batch grid.
    param_specs = [pl.BlockSpec(p.shape, lambda i: (0, 0)) for p in kernel_params]
    out_spec = pl.BlockSpec((tb, out_size), lambda i: (i, 0))

    # ---- VMEM budget from lane/sublane-padded tile sizes --------------------
    lanes = _round_up(tb, 128)
    vmem = 2 * _round_up(in_features, 16) * lanes * 2             # x tile (bf16, 2 bufs)
    vmem += 2 * _round_up(tb, 8) * _round_up(out_size, 128) * 4   # out tile (f32, 2 bufs)
    for p in kernel_params:
        sub = _round_up(p.shape[0], 16 if p.dtype == jnp.bfloat16 else 8)
        vmem += 2 * sub * _round_up(p.shape[1], 128) * p.dtype.itemsize
    vmem += 2 * sum(hidden_dims + (out_size,)) * lanes * 4        # live activations (headroom)
    vmem += 4 << 20                                               # slack
    vmem_bytes = int(min(max(vmem, 8 << 20), 32 << 20))           # << 64 MiB physical on v7x

    return pl.pallas_call(
        _decoder_kernel,
        out_shape=jax.ShapeDtypeStruct((B, out_size), x.dtype),
        grid_spec=pltpu.PrefetchScalarGridSpec(
            num_scalar_prefetch=0,
            grid=grid,
            in_specs=[x_spec] + param_specs,
            out_specs=out_spec),
        compiler_params=pltpu.CompilerParams(
            dimension_semantics=("parallel",),
            vmem_limit_bytes=vmem_bytes),
    )(xt, *kernel_params)


def init_decoder_params(key, num_units, output_size=48):
    """PyTorch nn.Linear-style params: w (out, in), b (out,), U(+-1/sqrt(fan_in))."""
    dims = [num_units, 16, 32, 64, 128, output_size]
    params = []
    for fan_in, fan_out in zip(dims[:-1], dims[1:]):
        key, kw, kb = jax.random.split(key, 3)
        bound = 1.0 / jnp.sqrt(jnp.float32(fan_in))
        w = jax.random.uniform(kw, (fan_out, fan_in), jnp.float32,
                               minval=-bound, maxval=bound)
        b = jax.random.uniform(kb, (fan_out,), jnp.float32,
                               minval=-bound, maxval=bound)
        params.append((w, b))
    return tuple(params)


def prepare_decoder_params(torch_params, act_dtype=None):
    """One-time (hoisted) conversion of PyTorch-layout params to kernel layout."""
    if act_dtype is None:
        act_dtype = _default_act_dtype()
    *hidden_layers, (w5, b5) = torch_params
    kparams = []
    for w, b in hidden_layers:
        kparams.append(w.astype(jnp.bfloat16))               # (out, in) bf16
        kparams.append(b.reshape(-1, 1).astype(act_dtype))    # (out, 1)
    kparams.append(w5.T.astype(jnp.bfloat16))                 # (in=128, out) bf16
    kparams.append(b5.reshape(1, -1).astype(jnp.float32))     # (1, out) f32
    return tuple(kparams)


def decoder_2_reference(x, torch_params):
    """Pure-JAX f32 reference (mirrors the PyTorch module exactly)."""
    h = x
    n = len(torch_params)
    for i, (w, b) in enumerate(torch_params):
        h = h @ w.T + b
        if i < n - 1:
            h = jnp.tanh(h)
    return h


if __name__ == "__main__":
    key = jax.random.PRNGKey(0)
    num_units = 8
    output_size = 48

    key, kp = jax.random.split(key)
    torch_params = init_decoder_params(kp, num_units, output_size)
    kparams = prepare_decoder_params(torch_params)   # hoisted out of forward path

    # Small single-tile case.
    key, kx = jax.random.split(key)
    x = jax.random.normal(kx, (8, num_units), jnp.float32)
    out = jax.block_until_ready(decoder_2_forward(x, kparams))
    ref = decoder_2_reference(x, torch_params)
    assert out.shape == (8, output_size)
    # bf16 MXU operands (and bf16 tanh on v6e/v7x) -> loosened tolerance.
    assert jnp.allclose(out, ref, atol=5e-2, rtol=5e-2), "mismatch vs reference"

    # Multi-step grid with a non-divisible batch (masked last tile).
    key, kx2 = jax.random.split(key)
    x2 = jax.random.normal(kx2, (200, num_units), jnp.float32)
    out2 = jax.block_until_ready(decoder_2_forward(x2, kparams, block_batch=128))
    ref2 = decoder_2_reference(x2, torch_params)
    assert out2.shape == (200, output_size)
    assert jnp.allclose(out2, ref2, atol=5e-2, rtol=5e-2), "mismatch (tiled)"

    print("KERNEL_OK")
</pallas_src>

<mosaic_0001>
module attributes {stable_mosaic.version = 11 : i64} {
  func.func @_decoder_kernel(%arg0: i32, %arg1: memref<8x8xbf16, #tpu.memory_space<vmem>>, %arg2: memref<16x8xbf16, #tpu.memory_space<vmem>>, %arg3: memref<16x1xf32, #tpu.memory_space<vmem>>, %arg4: memref<32x16xbf16, #tpu.memory_space<vmem>>, %arg5: memref<32x1xf32, #tpu.memory_space<vmem>>, %arg6: memref<64x32xbf16, #tpu.memory_space<vmem>>, %arg7: memref<64x1xf32, #tpu.memory_space<vmem>>, %arg8: memref<128x64xbf16, #tpu.memory_space<vmem>>, %arg9: memref<128x1xf32, #tpu.memory_space<vmem>>, %arg10: memref<128x48xbf16, #tpu.memory_space<vmem>>, %arg11: memref<1x48xf32, #tpu.memory_space<vmem>>, %arg12: memref<8x48xf32, #tpu.memory_space<vmem>>) attributes {dimension_semantics = [#tpu.dimension_semantics<parallel>], iteration_bounds = array<i64: 1>, scalar_prefetch = 0 : i64, scratch_operands = 0 : i64, tpu.core_type = #tpu.core_type<tc>, window_params = [{transform_indices = @transform_0, window_bounds = array<i64: 8, 8>}, {pipeline_mode = #tpu.pipeline_mode<synchronous>, transform_indices = @transform_1, window_bounds = array<i64: 16, 8>}, {pipeline_mode = #tpu.pipeline_mode<synchronous>, transform_indices = @transform_2, window_bounds = array<i64: 16, 1>}, {pipeline_mode = #tpu.pipeline_mode<synchronous>, transform_indices = @transform_3, window_bounds = array<i64: 32, 16>}, {pipeline_mode = #tpu.pipeline_mode<synchronous>, transform_indices = @transform_4, window_bounds = array<i64: 32, 1>}, {pipeline_mode = #tpu.pipeline_mode<synchronous>, transform_indices = @transform_5, window_bounds = array<i64: 64, 32>}, {pipeline_mode = #tpu.pipeline_mode<synchronous>, transform_indices = @transform_6, window_bounds = array<i64: 64, 1>}, {pipeline_mode = #tpu.pipeline_mode<synchronous>, transform_indices = @transform_7, window_bounds = array<i64: 128, 64>}, {pipeline_mode = #tpu.pipeline_mode<synchronous>, transform_indices = @transform_8, window_bounds = array<i64: 128, 1>}, {pipeline_mode = #tpu.pipeline_mode<synchronous>, transform_indices = @transform_9, window_bounds = array<i64: 128, 48>}, {pipeline_mode = #tpu.pipeline_mode<synchronous>, transform_indices = @transform_10, window_bounds = array<i64: 1, 48>}, {transform_indices = @transform_11, window_bounds = array<i64: 8, 48>}]} {
    %c0 = arith.constant 0 : index
    %c0_0 = arith.constant 0 : index
    %0 = vector.load %arg1[%c0, %c0_0] : memref<8x8xbf16, #tpu.memory_space<vmem>>, vector<8x8xbf16>
    %c0_1 = arith.constant 0 : index
    %c0_2 = arith.constant 0 : index
    %1 = vector.load %arg2[%c0_1, %c0_2] : memref<16x8xbf16, #tpu.memory_space<vmem>>, vector<16x8xbf16>
    %cst = arith.constant dense<0.000000e+00> : vector<16x8xf32>
    %2 = tpu.matmul %1, %0, %cst {dimension_numbers = #tpu.dot_dimension_numbers<[1], [0], [0], [1], [0, 0, 1, 1], [], []>} : vector<16x8xbf16>, vector<8x8xbf16>, vector<16x8xf32> -> vector<16x8xf32>
    %c0_3 = arith.constant 0 : index
    %c0_4 = arith.constant 0 : index
    %3 = vector.load %arg3[%c0_3, %c0_4] : memref<16x1xf32, #tpu.memory_space<vmem>>, vector<16x1xf32>
    %4 = vector.broadcast %3 : vector<16x1xf32> to vector<16x8xf32>
    %5 = arith.addf %2, %4 : vector<16x8xf32>
    %6 = math.tanh %5 : vector<16x8xf32>
    %7 = arith.truncf %6 : vector<16x8xf32> to vector<16x8xbf16>
    %c0_5 = arith.constant 0 : index
    %c0_6 = arith.constant 0 : index
    %8 = vector.load %arg4[%c0_5, %c0_6] : memref<32x16xbf16, #tpu.memory_space<vmem>>, vector<32x16xbf16>
    %cst_7 = arith.constant dense<0.000000e+00> : vector<32x8xf32>
    %9 = tpu.matmul %8, %7, %cst_7 {dimension_numbers = #tpu.dot_dimension_numbers<[1], [0], [0], [1], [0, 0, 1, 1], [], []>} : vector<32x16xbf16>, vector<16x8xbf16>, vector<32x8xf32> -> vector<32x8xf32>
    %c0_8 = arith.constant 0 : index
    %c0_9 = arith.constant 0 : index
    %10 = vector.load %arg5[%c0_8, %c0_9] : memref<32x1xf32, #tpu.memory_space<vmem>>, vector<32x1xf32>
    %11 = vector.broadcast %10 : vector<32x1xf32> to vector<32x8xf32>
    %12 = arith.addf %9, %11 : vector<32x8xf32>
    %13 = math.tanh %12 : vector<32x8xf32>
    %14 = arith.truncf %13 : vector<32x8xf32> to vector<32x8xbf16>
    %c0_10 = arith.constant 0 : index
    %c0_11 = arith.constant 0 : index
    %15 = vector.load %arg6[%c0_10, %c0_11] : memref<64x32xbf16, #tpu.memory_space<vmem>>, vector<64x32xbf16>
    %cst_12 = arith.constant dense<0.000000e+00> : vector<64x8xf32>
    %16 = tpu.matmul %15, %14, %cst_12 {dimension_numbers = #tpu.dot_dimension_numbers<[1], [0], [0], [1], [0, 0, 1, 1], [], []>} : vector<64x32xbf16>, vector<32x8xbf16>, vector<64x8xf32> -> vector<64x8xf32>
    %c0_13 = arith.constant 0 : index
    %c0_14 = arith.constant 0 : index
    %17 = vector.load %arg7[%c0_13, %c0_14] : memref<64x1xf32, #tpu.memory_space<vmem>>, vector<64x1xf32>
    %18 = vector.broadcast %17 : vector<64x1xf32> to vector<64x8xf32>
    %19 = arith.addf %16, %18 : vector<64x8xf32>
    %20 = math.tanh %19 : vector<64x8xf32>
    %21 = arith.truncf %20 : vector<64x8xf32> to vector<64x8xbf16>
    %c0_15 = arith.constant 0 : index
    %c0_16 = arith.constant 0 : index
    %22 = vector.load %arg8[%c0_15, %c0_16] : memref<128x64xbf16, #tpu.memory_space<vmem>>, vector<128x64xbf16>
    %cst_17 = arith.constant dense<0.000000e+00> : vector<128x8xf32>
    %23 = tpu.matmul %22, %21, %cst_17 {dimension_numbers = #tpu.dot_dimension_numbers<[1], [0], [0], [1], [0, 0, 1, 1], [], []>} : vector<128x64xbf16>, vector<64x8xbf16>, vector<128x8xf32> -> vector<128x8xf32>
    %c0_18 = arith.constant 0 : index
    %c0_19 = arith.constant 0 : index
    %24 = vector.load %arg9[%c0_18, %c0_19] : memref<128x1xf32, #tpu.memory_space<vmem>>, vector<128x1xf32>
    %25 = vector.broadcast %24 : vector<128x1xf32> to vector<128x8xf32>
    %26 = arith.addf %23, %25 : vector<128x8xf32>
    %27 = math.tanh %26 : vector<128x8xf32>
    %28 = arith.truncf %27 : vector<128x8xf32> to vector<128x8xbf16>
    %c0_20 = arith.constant 0 : index
    %c0_21 = arith.constant 0 : index
    %29 = vector.load %arg10[%c0_20, %c0_21] : memref<128x48xbf16, #tpu.memory_space<vmem>>, vector<128x48xbf16>
    %cst_22 = arith.constant dense<0.000000e+00> : vector<8x48xf32>
    %30 = tpu.matmul %28, %29, %cst_22 {dimension_numbers = #tpu.dot_dimension_numbers<[0], [0], [1], [1], [0, 1, 1, 1], [], []>} : vector<128x8xbf16>, vector<128x48xbf16>, vector<8x48xf32> -> vector<8x48xf32>
    %c0_23 = arith.constant 0 : index
    %c0_24 = arith.constant 0 : index
    %31 = vector.load %arg11[%c0_23, %c0_24] : memref<1x48xf32, #tpu.memory_space<vmem>>, vector<1x48xf32>
    %32 = vector.broadcast %31 : vector<1x48xf32> to vector<8x48xf32>
    %33 = arith.addf %30, %32 : vector<8x48xf32>
    %c0_25 = arith.constant 0 : index
    %c0_26 = arith.constant 0 : index
    %34 = vector.load %arg12[%c0_25, %c0_26] : memref<8x48xf32, #tpu.memory_space<vmem>>, vector<8x48xf32>
    tpu.vector_store %arg12[%c0_25, %c0_26], %33 {strides = array<i32>} : memref<8x48xf32, #tpu.memory_space<vmem>>, vector<8x48xf32>,
    return
  }
  func.func @transform_0(%arg0: i32) -> (i32, i32) {
    %c0_i32 = arith.constant 0 : i32
    %c0_i32_0 = arith.constant 0 : i32
    return %c0_i32, %arg0 : i32, i32
  }
  func.func @transform_1(%arg0: i32) -> (i32, i32) {
    %c0_i32 = arith.constant 0 : i32
    %c0_i32_0 = arith.constant 0 : i32
    %c0_i32_1 = arith.constant 0 : i32
    return %c0_i32, %c0_i32_0 : i32, i32
  }
  func.func @transform_2(%arg0: i32) -> (i32, i32) {
    %c0_i32 = arith.constant 0 : i32
    %c0_i32_0 = arith.constant 0 : i32
    %c0_i32_1 = arith.constant 0 : i32
    return %c0_i32, %c0_i32_0 : i32, i32
  }
  func.func @transform_3(%arg0: i32) -> (i32, i32) {
    %c0_i32 = arith.constant 0 : i32
    %c0_i32_0 = arith.constant 0 : i32
    %c0_i32_1 = arith.constant 0 : i32
    return %c0_i32, %c0_i32_0 : i32, i32
  }
  func.func @transform_4(%arg0: i32) -> (i32, i32) {
    %c0_i32 = arith.constant 0 : i32
    %c0_i32_0 = arith.constant 0 : i32
    %c0_i32_1 = arith.constant 0 : i32
    return %c0_i32, %c0_i32_0 : i32, i32
  }
  func.func @transform_5(%arg0: i32) -> (i32, i32) {
    %c0_i32 = arith.constant 0 : i32
    %c0_i32_0 = arith.constant 0 : i32
    %c0_i32_1 = arith.constant 0 : i32
    return %c0_i32, %c0_i32_0 : i32, i32
  }
  func.func @transform_6(%arg0: i32) -> (i32, i32) {
    %c0_i32 = arith.constant 0 : i32
    %c0_i32_0 = arith.constant 0 : i32
    %c0_i32_1 = arith.constant 0 : i32
    return %c0_i32, %c0_i32_0 : i32, i32
  }
  func.func @transform_7(%arg0: i32) -> (i32, i32) {
    %c0_i32 = arith.constant 0 : i32
    %c0_i32_0 = arith.constant 0 : i32
    %c0_i32_1 = arith.constant 0 : i32
    return %c0_i32, %c0_i32_0 : i32, i32
  }
  func.func @transform_8(%arg0: i32) -> (i32, i32) {
    %c0_i32 = arith.constant 0 : i32
    %c0_i32_0 = arith.constant 0 : i32
    %c0_i32_1 = arith.constant 0 : i32
    return %c0_i32, %c0_i32_0 : i32, i32
  }
  func.func @transform_9(%arg0: i32) -> (i32, i32) {
    %c0_i32 = arith.constant 0 : i32
    %c0_i32_0 = arith.constant 0 : i32
    %c0_i32_1 = arith.constant 0 : i32
    return %c0_i32, %c0_i32_0 : i32, i32
  }
  func.func @transform_10(%arg0: i32) -> (i32, i32) {
    %c0_i32 = arith.constant 0 : i32
    %c0_i32_0 = arith.constant 0 : i32
    %c0_i32_1 = arith.constant 0 : i32
    return %c0_i32, %c0_i32_0 : i32, i32
  }
  func.func @transform_11(%arg0: i32) -> (i32, i32) {
    %c0_i32 = arith.constant 0 : i32
    %c0_i32_0 = arith.constant 0 : i32
    return %arg0, %c0_i32 : i32, i32
  }
}

</mosaic_0001>

<bundles_post_ra>
// kernel: decoder_2_forward.1
= control target key start
LH: loop header
LB: loop body
LE: loop exit
PB: predicated region body
PF: predicated region fallthrough
CT: control target
= control target key end

     0   :  { %vm64_vm0 = vcmask 1043456   ;;  %v879_v2 = vmov 0   ;;  %vm60_vm1 = vcmask 64512   ;;  %s1109_s0 = inlined_call_operand.vmem [shape: bf16[8,8], index: 0, kind: input, shape index: {}]   ;;  %s1110_s1 = inlined_call_operand.vmem [shape: bf16[16,8], index: 1, kind: input, shape index: {}]   ;;  %s1111_s2 = inlined_call_operand.vmem [shape: f32[16,1], index: 2, kind: input, shape index: {}]   ;;  %s1112_s3 = inlined_call_operand.vmem [shape: bf16[32,16], index: 3, kind: input, shape index: {}]   ;;  %s1113_s4 = inlined_call_operand.vmem [shape: f32[32,1], index: 4, kind: input, shape index: {}]   ;;  %s1114_s5 = inlined_call_operand.vmem [shape: bf16[64,32], index: 5, kind: input, shape index: {}]   ;;  %s1115_s6 = inlined_call_operand.vmem [shape: f32[64,1], index: 6, kind: input, shape index: {}]   ;;  %s1116_s7 = inlined_call_operand.vmem [shape: bf16[128,64], index: 7, kind: input, shape index: {}]   ;;  %s1117_s8 = inlined_call_operand.vmem [shape: f32[128,1], index: 8, kind: input, shape index: {}]   ;;  %s1118_s9 = inlined_call_operand.vmem [shape: bf16[128,48], index: 9, kind: input, shape index: {}]   ;;  %s1119_s10 = inlined_call_operand.vmem [shape: f32[1,48], index: 10, kind: input, shape index: {}]   ;;  %s1120_s11 = inlined_call_operand.hbm [shape: f32[8,48], index: 11, kind: output, shape index: {}]  }
   0x1   :  { %v43_v0 = vld [vmem:[%s1111_s2] sm:$0xff]  ;;  %789 = vset.pattern.permute.xlu0 %v879_v2  ;;  %790 = vset.pattern.permute.xlu1 %v879_v2 }
   0x2   :  { %v40_v1 = vld [vmem:[%s1109_s0] sm:$0xf]  ;;  %47 = vperm.xlu0 %789, %v43_v0   ;;  %791 = vset.pattern.permute.xlu2 %v879_v2 }
   0x3   :  { %v66_v3 = vsel %vm64_vm0, %v40_v1, 0  ;;  %v757_v4 = vld [vmem:[%s1110_s1] sm:$0xff] }
   0x4   :  { %75 = vmatpush.bf16.msra.mxu0 %v66_v3 }
   0x5   :  { %16 = vsyncpa [#allocation3], 0  ;;  %v44_v5 = vld [vmem:[%s1111_s2 + $0x8] sm:$0xff]  ;;  %v169_v6 = vld [vmem:[%s1115_s6 + $0x30] sm:$0xff]  ;;  %vm123_vm2 = vcmask 130048   ;;  %vm231_vm3 = vcmask 261120  }
   0x6   :  { %v168_v7 = vld [vmem:[%s1115_s6 + $0x28] sm:$0xff]  ;;  %v163_v8 = vld [vmem:[%s1115_s6] sm:$0xff]  ;;  %v308_v11 = vld [vmem:[%s1117_s8 + $0x38] sm:$0xff]  ;;  %vm437_vm4 = vcmask 523264   ;;  %s880_s25 = smov [#allocation2]   ;;  %s641_s28 = sshll.u32 %s1120_s11, 4  ;;  %s642_s28 = int_to_ptr.hbm [resolvable:$true] %s641_s28 }
   0x7   :  { %654 = vmatmul.msk.bf16.vlgmr.msra.gmra.mxu0 %vm60_vm1, %v757_v4  ;;  %v302_v9 = vld [vmem:[%s1117_s8 + $0x8] sm:$0xff]  ;;  %v305_v10 = vld [vmem:[%s1117_s8 + $0x20] sm:$0xff]  ;;  %v311_v12 = vld [vmem:[%s1117_s8 + $0x50] sm:$0xff]  ;;  %s639_s26 = sshll.u32 %s880_s25, 4  ;;  %vm632_vm5 = vcmask 392192   ;;  %s640_s26 = int_to_ptr.vmem [resolvable:$true] %s639_s26 }
   0x8   :  { %v314_v13 = vld [vmem:[%s1117_s8 + $0x68] sm:$0xff]  ;;  %v91_v14 = vld [vmem:[%s1113_s4 + $0x10] sm:$0xff]  ;;  %v92_v15 = vld [vmem:[%s1113_s4 + $0x18] sm:$0xff] }
   0x9   :  { %105 = vperm.xlu1 %790, %v91_v14   ;;  %v170_v16 = vld [vmem:[%s1115_s6 + $0x38] sm:$0xff]  ;;  %v165_v17 = vld [vmem:[%s1115_s6 + $0x10] sm:$0xff]  ;;  %v89_v18 = vld [vmem:[%s1113_s4] sm:$0xff] }
   0xa   :  { %52 = vperm.xlu0 %789, %v44_v5   ;;  %95 = vperm.xlu2 %791, %v89_v18   ;;  %v164_v19 = vld [vmem:[%s1115_s6 + $0x8] sm:$0xff]  ;;  %v303_v21 = vld [vmem:[%s1117_s8 + $0x10] sm:$0xff]  ;;  %v167_v22 = vld [vmem:[%s1115_s6 + $0x20] sm:$0xff] }
   0xb   :  { %v90_v20 = vld [vmem:[%s1113_s4 + $0x8] sm:$0xff]  ;;  %v166_v24 = vld [vmem:[%s1115_s6 + $0x18] sm:$0xff]  ;;  %v309_v27 = vld [vmem:[%s1117_s8 + $0x40] sm:$0xff] }
   0xc   :  { %v306_v23 = vld [vmem:[%s1117_s8 + $0x28] sm:$0xff]  ;;  %v301_v28 = vld [vmem:[%s1117_s8] sm:$0xff]  ;;  %v312_v33 = vld [vmem:[%s1117_s8 + $0x58] sm:$0xff] }
   0xd   :  { %v304_v34 = vld [vmem:[%s1117_s8 + $0x18] sm:$0xff]  ;;  %v315_v37 = vld [vmem:[%s1117_s8 + $0x70] sm:$0xff]  ;;  %v758_v39 = vld [vmem:[%s1112_s3] sm:$0xff] }
   0xe   :  { %v307_v40 = vld [vmem:[%s1117_s8 + $0x30] sm:$0xff]  ;;  %v310_v41 = vld [vmem:[%s1117_s8 + $0x48] sm:$0xff]  ;;  %v313_v43 = vld [vmem:[%s1117_s8 + $0x60] sm:$0xff] }
   0xf   :  { %v759_v42 = vld [vmem:[%s1112_s3 + $0x8] sm:$0xff]  ;;  %v316_v44 = vld [vmem:[%s1117_s8 + $0x78] sm:$0xff]  ;;  %v760_v63 = vld [vmem:[%s1114_s5] sm:$0xff] }
  0x10   :  { %v761_v0 = vld [vmem:[%s1114_s5 + $0x8] sm:$0xff]  ;;  %v762_v1 = vld [vmem:[%s1114_s5 + $0x10] sm:$0xff]  ;;  %v763_v2 = vld [vmem:[%s1114_s5 + $0x18] sm:$0xff] }
  0x11   :  { %110 = vperm.xlu1 %790, %v92_v15  }
  0x12   :  { %203 = vperm.xlu0 %789, %v169_v6   ;;  %100 = vperm.xlu2 %791, %v90_v20  }
  0x19   :  { %208 = vperm.xlu1 %790, %v170_v16  }
  0x1a   :  { %198 = vperm.xlu0 %789, %v168_v7   ;;  %193 = vperm.xlu2 %791, %v167_v22  }
  0x21   :  { %183 = vperm.xlu1 %790, %v165_v17  }
  0x22   :  { %173 = vperm.xlu0 %789, %v163_v8   ;;  %188 = vperm.xlu2 %791, %v166_v24  }
  0x29   :  { %178 = vperm.xlu1 %790, %v164_v19  }
  0x2a   :  { %324 = vperm.xlu0 %789, %v302_v9   ;;  %319 = vperm.xlu2 %791, %v301_v28  }
  0x31   :  { %329 = vperm.xlu1 %790, %v303_v21  }
  0x32   :  { %339 = vperm.xlu0 %789, %v305_v10   ;;  %334 = vperm.xlu2 %791, %v304_v34  }
  0x39   :  { %344 = vperm.xlu1 %790, %v306_v23  }
  0x3a   :  { %354 = vperm.xlu0 %789, %v308_v11   ;;  %349 = vperm.xlu2 %791, %v307_v40   ;;  %v768_v40 = vld [vmem:[%s1116_s7 + $0x20] sm:$0xff] }
  0x41   :  { %359 = vperm.xlu1 %790, %v309_v27  }
  0x42   :  { %369 = vperm.xlu0 %789, %v311_v12   ;;  %364 = vperm.xlu2 %791, %v310_v41   ;;  %v765_v41 = vld [vmem:[%s1116_s7 + $0x8] sm:$0xff] }
  0x49   :  { %374 = vperm.xlu1 %790, %v312_v33  }
  0x4a   :  { %384 = vperm.xlu0 %789, %v314_v13   ;;  %379 = vperm.xlu2 %791, %v313_v43   ;;  %v766_v43 = vld [vmem:[%s1116_s7 + $0x10] sm:$0xff] }
  0x51   :  { %389 = vperm.xlu1 %790, %v315_v37  }
  0x52   :  { %394 = vperm.xlu2 %791, %v316_v44   ;;  %v770_v44 = vld [vmem:[%s1116_s7 + $0x30] sm:$0xff] }
  0x64   :  { %v96_v48 = vpop.permute.xlu2 %95 }
  0x6c   :  { %v101_v52 = vpop.permute.xlu2 %100 }
  0x74   :  { %v48_v25 = vpop.permute.xlu0 %47  ;;  %v194_v12 = vpop.permute.xlu2 %193 }
  0x7b   :  { %v106_v47 = vpop.permute.xlu1 %105 }
  0x7c   :  { %v53_v30 = vpop.permute.xlu0 %52  ;;  %v189_v20 = vpop.permute.xlu2 %188 }
  0x83   :  { %v111_v51 = vpop.permute.xlu1 %110 }
  0x84   :  { %v77_v26 = vpop.f32.mrf.mxu0  ;;  %v204_v10 = vpop.permute.xlu0 %203 }
  0x85   :  { %v78_v29 = vadd.f32 %v77_v26, %v48_v25 }
  0x87   :  { %793 = vtanh.f32 %v78_v29 }
  0x8b   :  { %v209_v9 = vpop.permute.xlu1 %208 }
  0x8c   :  { %v79_v31 = vpop.f32.mrf.mxu0  ;;  %v199_v15 = vpop.permute.xlu0 %198 }
  0x8d   :  { %v80_v32 = vadd.f32 %v79_v31, %v53_v30  ;;  %v794_v35 = vpop.eup %793 }
  0x8f   :  { %795 = vtanh.f32 %v80_v32 }
  0x93   :  { %v184_v13 = vpop.permute.xlu1 %183 }
  0x94   :  { %v174_v27 = vpop.permute.xlu0 %173 }
  0x95   :  { %v796_v36 = vpop.eup %795 }
  0x96   :  { %v84_v38 = vpack.c.bf16 %v796_v36, %v794_v35 }
  0x98   :  { %137 = vmatpush.bf16.msrb.mxu0 %v84_v38 }
  0x9b   :  { %663 = vmatmul.msk.bf16.vlgmr.msrb.gmra.mxu0 %vm123_vm2, %v758_v39  ;;  %v179_v24 = vpop.permute.xlu1 %178  ;;  %v764_v39 = vld [vmem:[%s1116_s7] sm:$0xff] }
  0xab   :  { %664 = vmatmul.msk.bf16.gmra.mxu0 %vm123_vm2, %v759_v42  ;;  %v769_v42 = vld [vmem:[%s1116_s7 + $0x28] sm:$0xff] }
 0x118   :  { %v139_v45 = vpop.f32.mrf.mxu0 }
 0x119   :  { %v140_v56 = vadd.f32 %v139_v45, %v96_v48  ;;  %v767_v45 = vld [vmem:[%s1116_s7 + $0x18] sm:$0xff]  ;;  %v320_v48 = vpop.permute.xlu2 %319 }
 0x120   :  { %v141_v46 = vpop.f32.mrf.mxu0 }
 0x121   :  { %v142_v54 = vadd.f32 %v141_v46, %v101_v52  ;;  %v771_v46 = vld [vmem:[%s1116_s7 + $0x38] sm:$0xff] }
 0x128   :  { %v144_v49 = vpop.f32.mrf.mxu0 }
 0x129   :  { %v145_v50 = vadd.f32 %v144_v49, %v106_v47 }
 0x12b   :  { %797 = vtanh.f32 %v145_v50  ;;  %v325_v50 = vpop.permute.xlu0 %324 }
 0x130   :  { %v146_v53 = vpop.f32.mrf.mxu0 }
 0x131   :  { %v147_v55 = vadd.f32 %v146_v53, %v111_v51  ;;  %v798_v57 = vpop.eup %797 }
 0x133   :  { %799 = vtanh.f32 %v147_v55 }
 0x134   :  { %801 = vtanh.f32 %v142_v54 }
 0x135   :  { %803 = vtanh.f32 %v140_v56 }
 0x139   :  { %v800_v58 = vpop.eup %799 }
 0x13a   :  { %v154_v59 = vpack.c.bf16 %v800_v58, %v798_v57  ;;  %v802_v60 = vpop.eup %801  ;;  %v330_v57 = vpop.permute.xlu1 %329 }
 0x13b   :  { %v804_v61 = vpop.eup %803 }
 0x13c   :  { %250 = vmatpush.bf16.msra.mxu2 %v154_v59  ;;  %v153_v62 = vpack.c.bf16 %v802_v60, %v804_v61  ;;  %v335_v59 = vpop.permute.xlu2 %334 }
 0x140   :  { %251 = vmatpush.bf16.msra.mxu2 %v153_v62 }
 0x143   :  { %681 = vmatmul.msk.bf16.vlgmr.msra.gmra.mxu2 %vm231_vm3, %v760_v63 }
 0x153   :  { %682 = vmatmul.msk.bf16.gmra.mxu2 %vm231_vm3, %v761_v0 }
 0x163   :  { %683 = vmatmul.msk.bf16.gmra.mxu2 %vm231_vm3, %v762_v1 }
 0x173   :  { %684 = vmatmul.msk.bf16.gmra.mxu2 %vm231_vm3, %v763_v2  ;;  %v340_v2 = vpop.permute.xlu0 %339 }
 0x1c6   :  { %v253_v3 = vpop.f32.mrf.mxu2 }
 0x1c7   :  { %v254_v30 = vadd.f32 %v253_v3, %v174_v27 }
 0x1ce   :  { %v255_v4 = vpop.f32.mrf.mxu2 }
 0x1cf   :  { %v256_v26 = vadd.f32 %v255_v4, %v179_v24  ;;  %v345_v4 = vpop.permute.xlu1 %344 }
 0x1d6   :  { %v258_v5 = vpop.f32.mrf.mxu2 }
 0x1d7   :  { %v259_v22 = vadd.f32 %v258_v5, %v184_v13  ;;  %v360_v24 = vpop.permute.xlu1 %359 }
 0x1de   :  { %v260_v6 = vpop.f32.mrf.mxu2 }
 0x1df   :  { %v261_v21 = vadd.f32 %v260_v6, %v189_v20 }
 0x1e6   :  { %v263_v7 = vpop.f32.mrf.mxu2 }
 0x1e7   :  { %v264_v19 = vadd.f32 %v263_v7, %v194_v12  ;;  %v350_v12 = vpop.permute.xlu2 %349 }
 0x1ee   :  { %v265_v8 = vpop.f32.mrf.mxu2 }
 0x1ef   :  { %v266_v17 = vadd.f32 %v265_v8, %v199_v15  ;;  %v355_v15 = vpop.permute.xlu0 %354 }
 0x1f6   :  { %v268_v11 = vpop.f32.mrf.mxu2 }
 0x1f7   :  { %v269_v14 = vadd.f32 %v268_v11, %v204_v10 }
 0x1f9   :  { %805 = vtanh.f32 %v269_v14 }
 0x1fe   :  { %v270_v16 = vpop.f32.mrf.mxu2 }
 0x1ff   :  { %v271_v18 = vadd.f32 %v270_v16, %v209_v9  ;;  %v806_v23 = vpop.eup %805 }
 0x201   :  { %807 = vtanh.f32 %v271_v18 }
 0x202   :  { %809 = vtanh.f32 %v266_v17 }
 0x203   :  { %811 = vtanh.f32 %v264_v19 }
 0x204   :  { %813 = vtanh.f32 %v261_v21 }
 0x205   :  { %815 = vtanh.f32 %v259_v22  ;;  %v365_v22 = vpop.permute.xlu2 %364 }
 0x206   :  { %817 = vtanh.f32 %v256_v26 }
 0x207   :  { %v808_v25 = vpop.eup %807  ;;  %819 = vtanh.f32 %v254_v30  ;;  %v375_v30 = vpop.permute.xlu1 %374 }
 0x208   :  { %v284_v28 = vpack.c.bf16 %v808_v25, %v806_v23  ;;  %v810_v29 = vpop.eup %809 }
 0x209   :  { %v812_v31 = vpop.eup %811 }
 0x20a   :  { %466 = vmatpush.bf16.msra.mxu1 %v284_v28  ;;  %780 = vmatpush.bf16.msra.mxu3 %v284_v28  ;;  %v283_v32 = vpack.c.bf16 %v810_v29, %v812_v31  ;;  %v814_v33 = vpop.eup %813 }
 0x20b   :  { %v816_v34 = vpop.eup %815 }
 0x20c   :  { %v282_v35 = vpack.c.bf16 %v814_v33, %v816_v34  ;;  %v818_v36 = vpop.eup %817  ;;  %v370_v33 = vpop.permute.xlu0 %369 }
 0x20d   :  { %v820_v37 = vpop.eup %819 }
 0x20e   :  { %467 = vmatpush.bf16.msra.mxu1 %v283_v32  ;;  %781 = vmatpush.bf16.msra.mxu3 %v283_v32  ;;  %v281_v38 = vpack.c.bf16 %v818_v36, %v820_v37 }
 0x212   :  { %468 = vmatpush.bf16.msra.mxu1 %v282_v35  ;;  %782 = vmatpush.bf16.msra.mxu3 %v282_v35 }
 0x216   :  { %469 = vmatpush.bf16.msra.mxu1 %v281_v38  ;;  %783 = vmatpush.bf16.msra.mxu3 %v281_v38 }
 0x219   :  { %717 = vmatmul.msk.bf16.vlgmr.msra.gmra.mxu1 %vm437_vm4, %v764_v39  ;;  %721 = vmatmul.msk.bf16.vlgmr.msra.gmra.mxu3 %vm437_vm4, %v768_v40  ;;  %v385_v39 = vpop.permute.xlu0 %384  ;;  %v779_v40 = vld [vmem:[%s1118_s9 + $0x38] sm:$0xff] }
 0x21a   :  { %619 = vmatpush.bf16.msra.mxu0 %v779_v40 }
 0x229   :  { %718 = vmatmul.msk.bf16.gmra.mxu1 %vm437_vm4, %v765_v41  ;;  %722 = vmatmul.msk.bf16.gmra.mxu3 %vm437_vm4, %v769_v42  ;;  %v380_v42 = vpop.permute.xlu2 %379 }
 0x239   :  { %719 = vmatmul.msk.bf16.gmra.mxu1 %vm437_vm4, %v766_v43  ;;  %723 = vmatmul.msk.bf16.gmra.mxu3 %vm437_vm4, %v770_v44  ;;  %v778_v43 = vld [vmem:[%s1118_s9 + $0x30] sm:$0xff] }
 0x23a   :  { %620 = vmatpush.bf16.msra.mxu0 %v778_v43 }
 0x249   :  { %720 = vmatmul.msk.bf16.gmra.mxu1 %vm437_vm4, %v767_v45  ;;  %724 = vmatmul.msk.bf16.gmra.mxu3 %vm437_vm4, %v771_v46  ;;  %v777_v46 = vld [vmem:[%s1118_s9 + $0x28] sm:$0xff] }
 0x24a   :  { %621 = vmatpush.bf16.msra.mxu0 %v777_v46 }
 0x296   :  { %v471_v47 = vpop.f32.mrf.mxu1 }
 0x297   :  { %v472_v49 = vadd.f32 %v471_v47, %v320_v48  ;;  %v776_v47 = vld [vmem:[%s1118_s9 + $0x20] sm:$0xff] }
 0x298   :  { %622 = vmatpush.bf16.msra.mxu0 %v776_v47 }
 0x299   :  { %821 = vtanh.f32 %v472_v49 }
 0x29c   :  { %v491_v7 = vpop.f32.mrf.mxu3 }
 0x29d   :  { %v492_v25 = vadd.f32 %v491_v7, %v360_v24 }
 0x29e   :  { %v473_v51 = vpop.f32.mrf.mxu1 }
 0x29f   :  { %v474_v52 = vadd.f32 %v473_v51, %v325_v50  ;;  %v822_v53 = vpop.eup %821 }
 0x2a1   :  { %823 = vtanh.f32 %v474_v52  ;;  %v775_v52 = vld [vmem:[%s1118_s9 + $0x18] sm:$0xff] }
 0x2a2   :  { %623 = vmatpush.bf16.msra.mxu0 %v775_v52 }
 0x2a4   :  { %v493_v13 = vpop.f32.mrf.mxu3 }
 0x2a5   :  { %v494_v23 = vadd.f32 %v493_v13, %v365_v22 }
 0x2a6   :  { %v476_v54 = vpop.f32.mrf.mxu1 }
 0x2a7   :  { %v824_v55 = vpop.eup %823  ;;  %v477_v58 = vadd.f32 %v476_v54, %v330_v57 }
 0x2a8   :  { %v527_v56 = vpack.c.bf16 %v824_v55, %v822_v53  ;;  %v395_v53 = vpop.permute.xlu2 %394  ;;  %v390_v55 = vpop.permute.xlu1 %389 }
 0x2a9   :  { %825 = vtanh.f32 %v477_v58  ;;  %v773_v58 = vld [vmem:[%s1118_s9 + $0x8] sm:$0xff] }
 0x2aa   :  { %555 = vxpose.xlu0.c.b16.start [1/8] (narrow) %v527_v56, 16  ;;  %v774_v56 = vld [vmem:[%s1118_s9 + $0x10] sm:$0xff] }
 0x2ab   :  { %624 = vmatpush.bf16.msra.mxu0 %v774_v56 }
 0x2ac   :  { %v496_v19 = vpop.f32.mrf.mxu3 }
 0x2ad   :  { %v497_v34 = vadd.f32 %v496_v19, %v370_v33 }
 0x2ae   :  { %v478_v60 = vpop.f32.mrf.mxu1 }
 0x2af   :  { %v479_v61 = vadd.f32 %v478_v60, %v335_v59  ;;  %v826_v62 = vpop.eup %825  ;;  %625 = vmatpush.bf16.msra.mxu0 %v773_v58  ;;  %v772_v59 = vld [vmem:[%s1118_s9] sm:$0xff] }
 0x2b1   :  { %827 = vtanh.f32 %v479_v61 }
 0x2b3   :  { %626 = vmatpush.bf16.msra.mxu0 %v772_v59 }
 0x2b4   :  { %v498_v26 = vpop.f32.mrf.mxu3 }
 0x2b5   :  { %v499_v32 = vadd.f32 %v498_v26, %v375_v30 }
 0x2b6   :  { %v481_v63 = vpop.f32.mrf.mxu1 }
 0x2b7   :  { %v828_v0 = vpop.eup %827  ;;  %v482_v3 = vadd.f32 %v481_v63, %v340_v2 }
 0x2b8   :  { %v528_v1 = vpack.c.bf16 %v828_v0, %v826_v62  ;;  %v792_v0 = vld [vmem:[%s1119_s10] ss:$0 sm:$0xff] }
 0x2b9   :  { %829 = vtanh.f32 %v482_v3 }
 0x2ba   :  { %556 = vxpose.xlu0.c.b16.cont [2/8] (narrow) %v528_v1, 16 }
 0x2bc   :  { %v501_v31 = vpop.f32.mrf.mxu3 }
 0x2bd   :  { %v502_v44 = vadd.f32 %v501_v31, %v380_v42 }
 0x2be   :  { %v483_v5 = vpop.f32.mrf.mxu1 }
 0x2bf   :  { %v484_v6 = vadd.f32 %v483_v5, %v345_v4  ;;  %v830_v8 = vpop.eup %829 }
 0x2c1   :  { %831 = vtanh.f32 %v484_v6 }
 0x2c4   :  { %v503_v35 = vpop.f32.mrf.mxu3 }
 0x2c5   :  { %v504_v41 = vadd.f32 %v503_v35, %v385_v39 }
 0x2c6   :  { %v486_v9 = vpop.f32.mrf.mxu1 }
 0x2c7   :  { %v832_v10 = vpop.eup %831  ;;  %v487_v14 = vadd.f32 %v486_v9, %v350_v12 }
 0x2c8   :  { %v529_v11 = vpack.c.bf16 %v832_v10, %v830_v8 }
 0x2c9   :  { %833 = vtanh.f32 %v487_v14 }
 0x2ca   :  { %557 = vxpose.xlu0.c.b16.cont [3/8] (narrow) %v529_v11, 16 }
 0x2cc   :  { %v506_v45 = vpop.f32.mrf.mxu3 }
 0x2cd   :  { %v507_v57 = vadd.f32 %v506_v45, %v390_v55 }
 0x2ce   :  { %v488_v16 = vpop.f32.mrf.mxu1 }
 0x2cf   :  { %v489_v17 = vadd.f32 %v488_v16, %v355_v15  ;;  %v834_v18 = vpop.eup %833 }
 0x2d1   :  { %835 = vtanh.f32 %v489_v17 }
 0x2d2   :  { %837 = vtanh.f32 %v494_v23 }
 0x2d3   :  { %839 = vtanh.f32 %v492_v25 }
 0x2d4   :  { %841 = vtanh.f32 %v499_v32  ;;  %v508_v50 = vpop.f32.mrf.mxu3 }
 0x2d5   :  { %843 = vtanh.f32 %v497_v34  ;;  %v509_v54 = vadd.f32 %v508_v50, %v395_v53 }
 0x2d6   :  { %845 = vtanh.f32 %v504_v41 }
 0x2d7   :  { %v836_v20 = vpop.eup %835  ;;  %847 = vtanh.f32 %v502_v44 }
 0x2d8   :  { %v530_v21 = vpack.c.bf16 %v836_v20, %v834_v18  ;;  %v838_v27 = vpop.eup %837  ;;  %849 = vtanh.f32 %v509_v54 }
 0x2d9   :  { %v840_v28 = vpop.eup %839  ;;  %851 = vtanh.f32 %v507_v57 }
 0x2da   :  { %558 = vxpose.xlu0.c.b16.cont [4/8] (narrow) %v530_v21, 16  ;;  %v531_v29 = vpack.c.bf16 %v838_v27, %v840_v28  ;;  %v842_v36 = vpop.eup %841 }
 0x2db   :  { %v844_v37 = vpop.eup %843 }
 0x2dc   :  { %v532_v38 = vpack.c.bf16 %v842_v36, %v844_v37  ;;  %v846_v48 = vpop.eup %845 }
 0x2dd   :  { %v848_v49 = vpop.eup %847 }
 0x2de   :  { %v533_v51 = vpack.c.bf16 %v846_v48, %v848_v49  ;;  %v850_v60 = vpop.eup %849 }
 0x2df   :  { %v852_v61 = vpop.eup %851 }
 0x2e0   :  { %v534_v62 = vpack.c.bf16 %v850_v60, %v852_v61 }
 0x2ea   :  { %559 = vxpose.xlu0.c.b16.cont [5/8] (narrow) %v531_v29, 16 }
 0x2fa   :  { %560 = vxpose.xlu0.c.b16.cont [6/8] (narrow) %v532_v38, 16 }
 0x30a   :  { %561 = vxpose.xlu0.c.b16.cont [7/8] (narrow) %v533_v51, 16 }
 0x31a   :  { %562 = vxpose.xlu0.c.b16.end [8/8] (narrow) %v534_v62, 16 }
 0x356   :  { %v563_v63 = vpop.trf.xlu0 }
 0x357   :  { %627 = vmatmul.bf16.vlgmr.msra.gmra.mxu0 %v563_v63 }
 0x3d4   :  { %v628_v1 = vpop.f32.mrf.mxu0 }
 0x3d5   :  { %v629_v2 = vadd.f32 %v792_v0, %v628_v1 }
 0x3d7   :  { %633 = vst.msk [vmem:[#allocation2] sm:$0xff] %vm632_vm5, %v629_v2 }
 0x3d8   :  { %644 = dma.vmem_to_hbm [thread:$0]  %s640_s26, 128, %s642_s28, [#allocation3]  }
 0x3dc   :  { %v630_v3 = vpop.f32.mrf.mxu0 }
 0x3dd   :  { %877 = dma.done.wait [#allocation3], 128  }
 0x3de   :  { %878 = vsyncadd [#allocation3], 4294967168 }
 0x3df   :  { %649 = vsyncpa [#allocation3], 1 }

</bundles_post_ra>
